<compile_context>
chip_gen: v5e
topology: v5e:2x2
jax: 0.10.0
libtpu: 0.0.40
codegen_flags: <defaults>
</compile_context>

<pallas_src>
import math

import jax
import jax.numpy as jnp
from jax.experimental import pallas as pl
from jax.experimental.pallas import tpu as pltpu

LANES = 128
TARGET_BLOCK_ROWS = 2048  # 2048x128 f32 = 1 MiB/block; 2 inputs x 2 buffers = 4 MiB VMEM


def _cdiv(a, b):
    return -(-a // b)


def _round_up(x, m):
    return _cdiv(x, m) * m


def _min_sublane_rows(dtype):
    """Minimum second-minor tile size for the dtype (f32: 8, bf16: 16, int8/fp8: 32)."""
    itemsize = jnp.dtype(dtype).itemsize
    return 8 * max(1, 4 // max(1, itemsize))


def _sqdiff_sum_kernel(x_ref, y_ref, out_ref, acc_ref):
    """Accumulate sum((x - y)^2) over the inner (reduction) grid axis.

    acc_ref is an (8, 128) vreg-shaped accumulator kept in VMEM. Each block of shape
    (block_rows, 128) is viewed as (block_rows//8, 8, 128) — a no-copy reshape that
    matches the (8, 128) VMEM tiling — and reduced over the leading axis with plain
    vreg adds. The loop-carried dependency is a single vreg add; the cross-lane /
    cross-sublane reduction to a scalar happens once, in the wrapper.
    """
    s = pl.program_id(1)

    @pl.when(s == 0)
    def _():
        acc_ref[...] = jnp.zeros_like(acc_ref)

    d = x_ref[...].astype(jnp.float32) - y_ref[...].astype(jnp.float32)
    block_rows = d.shape[0]
    d2 = (d * d).reshape(block_rows // 8, 8, LANES)
    acc_ref[...] += jnp.sum(d2, axis=0)

    @pl.when(s == pl.num_programs(1) - 1)
    def _():
        out_ref[...] = acc_ref[...][None]  # (8, 128) -> (1, 8, 128) lane-dense store


def _sum_squared_diff(prediction, target):
    """sum((prediction - target)^2) over all elements, computed on-TPU via Pallas."""
    n = int(prediction.size)
    x = prediction.reshape(-1)
    y = target.reshape(-1)

    sub = max(_min_sublane_rows(x.dtype), _min_sublane_rows(y.dtype))
    rows_needed = _cdiv(n, LANES)
    block_rows = min(TARGET_BLOCK_ROWS, _round_up(rows_needed, sub))
    steps_total = _cdiv(rows_needed, block_rows)
    # Leading parallel axis: shards the stream across both TensorCores on v7x,
    # harmless (size 1 or a serial loop of 2) on single-TC v5e/v6e.
    num_outer = 2 if steps_total >= 2 else 1
    inner = _cdiv(steps_total, num_outer)
    rows_padded = num_outer * inner * block_rows
    pad = rows_padded * LANES - n

    if pad:
        # Zero padding is exact for a squared-difference sum: (0 - 0)^2 == 0,
        # so no mask stream is needed. When n is already block-aligned this branch
        # (and its HBM copy) is skipped entirely.
        x = jnp.pad(x, (0, pad))
        y = jnp.pad(y, (0, pad))
    x = x.reshape(rows_padded, LANES)
    y = y.reshape(rows_padded, LANES)

    in_spec = pl.BlockSpec((block_rows, LANES), lambda p, s: (p * inner + s, 0))
    out_spec = pl.BlockSpec((1, 8, LANES), lambda p, s: (p, 0, 0))

    partials = pl.pallas_call(
        _sqdiff_sum_kernel,
        out_shape=jax.ShapeDtypeStruct((num_outer, 8, LANES), jnp.float32),
        grid_spec=pltpu.PrefetchScalarGridSpec(
            num_scalar_prefetch=0,
            grid=(num_outer, inner),
            in_specs=[in_spec, in_spec],
            out_specs=out_spec,
            scratch_shapes=[pltpu.VMEM((8, LANES), jnp.float32)],
        ),
        compiler_params=pltpu.CompilerParams(
            dimension_semantics=("parallel", "arbitrary"),
        ),
    )(x, y)

    return jnp.sum(partials)


def gaussian_nll_loss(prediction, target, var=1.0, *, full=False, eps=1e-6):
    """torch.nn.GaussianNLLLoss(full, eps, reduction='mean') with constant variance `var`.

    `var` may be a traced scalar (e.g. changed per epoch) without triggering kernel
    recompilation: it only enters the tiny scalar epilogue, not the Pallas kernel.
    """
    assert prediction.shape == target.shape
    n = int(prediction.size)

    ssd = _sum_squared_diff(prediction, target)
    var_c = jnp.maximum(jnp.asarray(var, jnp.float32), jnp.float32(eps))
    loss = 0.5 * (jnp.log(var_c) + (ssd / n) / var_c)
    if full:
        loss = loss + 0.5 * math.log(2.0 * math.pi)
    return loss.astype(jnp.float32)


def _reference(prediction, target, var, eps=1e-6):
    v = jnp.maximum(jnp.float32(var), jnp.float32(eps))
    p = prediction.astype(jnp.float32)
    t = target.astype(jnp.float32)
    return jnp.mean(0.5 * (jnp.log(v) + (p - t) ** 2 / v))


if __name__ == "__main__":
    key = jax.random.PRNGKey(0)
    k1, k2, k3, k4 = jax.random.split(key, 4)

    # NCHW inputs, consistent with the module's forward(prediction, target).
    B, C, H, W = 2, 4, 16, 16
    prediction = jax.random.normal(k1, (B, C, H, W), dtype=jnp.float32)
    target = jax.random.normal(k2, (B, C, H, W), dtype=jnp.float32)

    # val_multiplication=1 is the module default; self.var = ones(target.shape) * val_mul.
    # TODO(synk): BaseLoss epoch/state/device/logging hooks are host-side bookkeeping with
    # no kernel equivalent; the constant-var tensor is folded analytically instead of streamed.
    val_multiplication = 1.0
    loss = gaussian_nll_loss(prediction, target, var=val_multiplication)
    loss = jax.block_until_ready(loss)
    ref = _reference(prediction, target, val_multiplication)
    assert jnp.allclose(loss, ref, rtol=1e-5, atol=1e-6), (loss, ref)

    # Second check: ragged element count (exercises the zero-pad tail path) and var != 1.
    pred2 = jax.random.normal(k3, (3, 5, 7, 11), dtype=jnp.float32)
    targ2 = jax.random.normal(k4, (3, 5, 7, 11), dtype=jnp.float32)
    loss2 = gaussian_nll_loss(pred2, targ2, var=2.0)
    loss2 = jax.block_until_ready(loss2)
    ref2 = _reference(pred2, targ2, 2.0)
    assert jnp.allclose(loss2, ref2, rtol=1e-5, atol=1e-6), (loss2, ref2)

    # Third check: larger multi-block input (exercises the 2-way parallel outer axis
    # and the inner accumulation loop) with bf16 inputs.
    pred3 = jax.random.normal(k1, (4, 8, 128, 128), dtype=jnp.bfloat16)
    targ3 = jax.random.normal(k2, (4, 8, 128, 128), dtype=jnp.bfloat16)
    loss3 = gaussian_nll_loss(pred3, targ3, var=0.5)
    loss3 = jax.block_until_ready(loss3)
    ref3 = _reference(pred3, targ3, 0.5)
    assert jnp.allclose(loss3, ref3, rtol=1e-3, atol=1e-4), (loss3, ref3)

    print("KERNEL_OK")
</pallas_src>

<mosaic_0001>
module attributes {stable_mosaic.version = 11 : i64} {
  func.func @_sqdiff_sum_kernel(%arg0: i32, %arg1: i32, %arg2: memref<16x128xf32, #tpu.memory_space<vmem>>, %arg3: memref<16x128xf32, #tpu.memory_space<vmem>>, %arg4: memref<1x8x128xf32, #tpu.memory_space<vmem>>, %arg5: memref<8x128xf32, #tpu.memory_space<vmem>>) attributes {dimension_semantics = [#tpu.dimension_semantics<parallel>, #tpu.dimension_semantics<arbitrary>], iteration_bounds = array<i64: 1, 1>, scalar_prefetch = 0 : i64, scratch_operands = 1 : i64, tpu.core_type = #tpu.core_type<tc>, window_params = [{transform_indices = @transform_0, window_bounds = array<i64: 16, 128>}, {transform_indices = @transform_1, window_bounds = array<i64: 16, 128>}, {transform_indices = @transform_2, window_bounds = array<i64: 1, 8, 128>}]} {
    %c0_i32 = arith.constant 0 : i32
    %0 = arith.cmpi eq, %arg1, %c0_i32 : i32
    %1 = arith.extui %0 : i1 to i32
    %c0_i32_0 = arith.constant 0 : i32
    %2 = arith.cmpi ne, %1, %c0_i32_0 : i32
    scf.if %2 {
      %cst_10 = arith.constant 0.000000e+00 : f32
      %15 = vector.broadcast %cst_10 : f32 to vector<8x128xf32>
      %c0_11 = arith.constant 0 : index
      %c0_12 = arith.constant 0 : index
      %16 = vector.load %arg5[%c0_11, %c0_12] : memref<8x128xf32, #tpu.memory_space<vmem>>, vector<8x128xf32>
      tpu.vector_store %arg5[%c0_11, %c0_12], %15 {strides = array<i32>} : memref<8x128xf32, #tpu.memory_space<vmem>>, vector<8x128xf32>,
    } else {
    }
    %c0 = arith.constant 0 : index
    %c0_1 = arith.constant 0 : index
    %3 = vector.load %arg2[%c0, %c0_1] : memref<16x128xf32, #tpu.memory_space<vmem>>, vector<16x128xf32>
    %c0_2 = arith.constant 0 : index
    %c0_3 = arith.constant 0 : index
    %4 = vector.load %arg3[%c0_2, %c0_3] : memref<16x128xf32, #tpu.memory_space<vmem>>, vector<16x128xf32>
    %5 = arith.subf %3, %4 : vector<16x128xf32>
    %6 = arith.mulf %5, %5 : vector<16x128xf32>
    %7 = vector.shape_cast %6 : vector<16x128xf32> to vector<2x8x128xf32>
    %c0_4 = arith.constant 0 : index
    %c0_5 = arith.constant 0 : index
    %8 = vector.load %arg5[%c0_4, %c0_5] : memref<8x128xf32, #tpu.memory_space<vmem>>, vector<8x128xf32>
    %cst = arith.constant dense<0.000000e+00> : vector<8x128xf32>
    %9 = vector.multi_reduction <add>, %7, %cst [0] : vector<2x8x128xf32> to vector<8x128xf32>
    %10 = arith.addf %8, %9 : vector<8x128xf32>
    %c0_6 = arith.constant 0 : index
    %c0_7 = arith.constant 0 : index
    %11 = vector.load %arg5[%c0_6, %c0_7] : memref<8x128xf32, #tpu.memory_space<vmem>>, vector<8x128xf32>
    tpu.vector_store %arg5[%c0_6, %c0_7], %10 {strides = array<i32>} : memref<8x128xf32, #tpu.memory_space<vmem>>, vector<8x128xf32>,
    %c0_i32_8 = arith.constant 0 : i32
    %12 = arith.cmpi eq, %arg1, %c0_i32_8 : i32
    %13 = arith.extui %12 : i1 to i32
    %c0_i32_9 = arith.constant 0 : i32
    %14 = arith.cmpi ne, %13, %c0_i32_9 : i32
    scf.if %14 {
      %c0_10 = arith.constant 0 : index
      %c0_11 = arith.constant 0 : index
      %15 = vector.load %arg5[%c0_10, %c0_11] : memref<8x128xf32, #tpu.memory_space<vmem>>, vector<8x128xf32>
      %16 = vector.shape_cast %15 : vector<8x128xf32> to vector<1x8x128xf32>
      %c0_12 = arith.constant 0 : index
      %c0_13 = arith.constant 0 : index
      %c0_14 = arith.constant 0 : index
      %17 = vector.load %arg4[%c0_12, %c0_13, %c0_14] : memref<1x8x128xf32, #tpu.memory_space<vmem>>, vector<1x8x128xf32>
      tpu.vector_store %arg4[%c0_12, %c0_13, %c0_14], %16 {strides = array<i32>} : memref<1x8x128xf32, #tpu.memory_space<vmem>>, vector<1x8x128xf32>,
    } else {
    }
    return
  }
  func.func @transform_0(%arg0: i32, %arg1: i32) -> (i32, i32) {
    %c1_i32 = arith.constant 1 : i32
    %0 = arith.muli %arg0, %c1_i32 : i32
    %1 = arith.addi %0, %arg1 : i32
    %c0_i32 = arith.constant 0 : i32
    %c0_i32_0 = arith.constant 0 : i32
    return %1, %c0_i32 : i32, i32
  }
  func.func @transform_1(%arg0: i32, %arg1: i32) -> (i32, i32) {
    %c1_i32 = arith.constant 1 : i32
    %0 = arith.muli %arg0, %c1_i32 : i32
    %1 = arith.addi %0, %arg1 : i32
    %c0_i32 = arith.constant 0 : i32
    %c0_i32_0 = arith.constant 0 : i32
    return %1, %c0_i32 : i32, i32
  }
  func.func @transform_2(%arg0: i32, %arg1: i32) -> (i32, i32, i32) {
    %c0_i32 = arith.constant 0 : i32
    %c0_i32_0 = arith.constant 0 : i32
    %c0_i32_1 = arith.constant 0 : i32
    return %arg0, %c0_i32, %c0_i32_0 : i32, i32, i32
  }
}

</mosaic_0001>

<bundles_post_ra>
// kernel: tpu_custom_call.1
= control target key start
LH: loop header
LB: loop body
LE: loop exit
PB: predicated region body
PF: predicated region fallthrough
CT: control target
= control target key end

     0   :  { %7 = vsyncpa [#allocation4], 0  ;;  %s208_s0 = inlined_call_operand.hbm [shape: f32[16,128], index: 0, kind: input, shape index: {}]   ;;  %s209_s1 = inlined_call_operand.hbm [shape: f32[16,128], index: 1, kind: input, shape index: {}]   ;;  %s210_s2 = inlined_call_operand.hbm [shape: f32[1,8,128], index: 2, kind: output, shape index: {}]  }
   0x1   :  { %8 = vsyncpa [#allocation7], 0 }
   0x2   :  { %9 = vsyncpa [#allocation5], 0  ;;  %s18_s11 = sshll.u32 %s208_s0, 4  ;;  %s179_s12 = smov [#allocation3]   ;;  %s19_s11 = int_to_ptr.hbm [resolvable:$true] %s18_s11 }
   0x3   :  { %s20_s13 = sshll.u32 %s179_s12, 4  ;;  %s35_s16 = sshll.u32 %s209_s1, 4  ;;  %s21_s13 = int_to_ptr.vmem [resolvable:$true] %s20_s13  ;;  %s36_s16 = int_to_ptr.hbm [resolvable:$true] %s35_s16 }
   0x4   :  { %s180_s17 = smov 128   ;;  %s181_s18 = smov 8  }
   0x5   :  { %26 = dma.hbm_to_vmem [thread:$0]  %s19_s11, 256, %s21_s13, [#allocation4], %s180_s17, %s180_s17, %s181_s18  }
   0x6   :  { %s182_s19 = smov [#allocation6]  }
   0x7   :  { %s37_s20 = sshll.u32 %s182_s19, 4  ;;  %s38_s20 = int_to_ptr.vmem [resolvable:$true] %s37_s20 }
   0x8   :  { %43 = dma.hbm_to_vmem [thread:$0]  %s36_s16, 256, %s38_s20, [#allocation7], %s180_s17, %s180_s17, %s181_s18  }
   0x9   :  { %173 = dma.done.wait [#allocation4], 256  }
   0xa   :  { %174 = vsyncadd [#allocation4], 4294967040 }
   0xb   :  { %175 = dma.done.wait [#allocation7], 256  }
   0xc   :  { %176 = vsyncadd [#allocation7], 4294967040  ;;  %v61_v0 = vld [vmem:[#allocation3] sm:$0xff]  ;;  %v62_v1 = vld [vmem:[#allocation3 + $0x8] sm:$0xff]  ;;  %s183_s0 = smov [#allocation8]   ;;  %s85_s23 = sshll.u32 %s210_s2, 4  ;;  %s86_s23 = int_to_ptr.hbm [resolvable:$true] %s85_s23 }
   0xd   :  { %v63_v2 = vld [vmem:[#allocation6] sm:$0xff]  ;;  %v64_v3 = vld [vmem:[#allocation6 + $0x8] sm:$0xff]  ;;  %s83_s1 = sshll.u32 %s183_s0, 4  ;;  %s84_s1 = int_to_ptr.vmem [resolvable:$true] %s83_s1 }
   0xe   :  { %v65_v4 = vsub.f32 %v61_v0, %v63_v2  ;;  %v66_v5 = vsub.f32 %v62_v1, %v64_v3 }
  0x10   :  { %v67_v6 = vmul.f32 %v65_v4, %v65_v4  ;;  %v68_v7 = vmul.f32 %v66_v5, %v66_v5 }
  0x12   :  { %v70_v8 = vadd.f32 %v68_v7, %v67_v6 }
  0x14   :  { %77 = vst [vmem:[#allocation8] sm:$0xff] %v70_v8 }
  0x15   :  { %88 = dma.vmem_to_hbm [thread:$0]  %s84_s1, 128, %s86_s23, [#allocation5]  }
  0x16   :  { %177 = dma.done.wait [#allocation5], 128  }
  0x17   :  { %178 = vsyncadd [#allocation5], 4294967168 }
  0x18   :  { %93 = vsyncpa [#allocation4], 1 }
  0x19   :  { %94 = vsyncpa [#allocation7], 1 }
  0x1a   :  { %95 = vsyncpa [#allocation5], 1 }

</bundles_post_ra>
